<compile_context>
chip_gen: v7x
topology: tpu7x:2x2x1
jax: 0.10.0
libtpu: 0.0.40
codegen_flags: <defaults>
</compile_context>

<pallas_src>
import functools

import jax
import jax.numpy as jnp
from jax.experimental import pallas as pl
from jax.experimental.pallas import tpu as pltpu


def _round_up(a, b):
    return (a + b - 1) // b * b


# --------------------------- kernel ------------------------------------------


def _crf_kernel(x_ref, w_ref, b_ref, *rest, activation, scale, blank_score,
                mxu_dtype):
    """One row tile: (TB, D) @ (D, C_pad) + bias, tanh, scale, blank fixup."""
    if blank_score is not None:
        mask_ref, o_ref = rest
    else:
        (o_ref,) = rest

    x = x_ref[...]
    if mxu_dtype is not None:
        x = x.astype(mxu_dtype)          # VPU cast; weights already mxu_dtype.
    scores = jnp.dot(x, w_ref[...], preferred_element_type=jnp.float32)
    scores = scores + b_ref[...]         # f32 epilogue
    if activation == "tanh":
        scores = jnp.tanh(scores)        # EUP slot
    if scale is not None:
        scores = scores * scale
    if blank_score is not None:
        # Blank lanes (zero columns of the folded weights) get the constant;
        # identical to the post-activation/scale pad in the PyTorch module.
        scores = jnp.where(mask_ref[...] != 0.0, jnp.float32(blank_score), scores)
    o_ref[...] = scores.astype(o_ref.dtype)


# --------------------------- wrapper ------------------------------------------


def linear_crf_encoder_forward(x, weight_t, bias=None, *, n_base,
                               activation=None, scale=None, blank_score=None,
                               expand_blanks=True, block_rows=512,
                               mxu_dtype=jnp.bfloat16, out_dtype=None,
                               vmem_budget_bytes=24 << 20):
    """Pallas LinearCRFEncoder forward.

    x:        (T, N, insize) float32
    weight_t: (insize, C)    -- PyTorch linear.weight transposed
    bias:     (C,) or None
    Returns   (T, N, C) or (T, N, C//n_base*(n_base+1)) with blank expansion.
    """
    if activation not in (None, "tanh"):
        raise NotImplementedError(f"activation {activation!r} not supported")

    T, N, D = x.shape
    Dw, C = weight_t.shape
    assert Dw == D, (Dw, D)
    out_dtype = out_dtype or x.dtype

    if bias is None:
        bias = jnp.zeros((C,), jnp.float32)
    bias = bias.astype(jnp.float32)

    expand = (blank_score is not None) and expand_blanks

    # ---- Fold the blank expansion into the weights (done once, outside the
    # kernel; with fixed module weights this is hoisted / constant-folded).
    if expand:
        assert C % n_base == 0
        C_out = (C // n_base) * (n_base + 1)
        src = jnp.arange(C)
        dst = (src // n_base) * (n_base + 1) + 1 + (src % n_base)
        w_full = jnp.zeros((D, C_out), weight_t.dtype).at[:, dst].set(weight_t)
        b_full = jnp.zeros((C_out,), jnp.float32).at[dst].set(bias)
        blank_mask = jnp.zeros((C_out,), jnp.float32)
        blank_mask = blank_mask.at[jnp.arange(0, C_out, n_base + 1)].set(1.0)
    else:
        C_out = C
        w_full, b_full, blank_mask = weight_t, bias, None

    # ---- Lane-dense output: pad the class axis up to a multiple of 128 so the
    # kernel's stores are unmasked (bonito's C_out = 1280 is already aligned).
    C_pad = max(_round_up(C_out, 128), 128)
    if C_pad != C_out:
        w_full = jnp.pad(w_full, ((0, 0), (0, C_pad - C_out)))
        b_full = jnp.pad(b_full, (0, C_pad - C_out))
        if blank_mask is not None:
            blank_mask = jnp.pad(blank_mask, (0, C_pad - C_out))

    if mxu_dtype is not None:
        w_full = w_full.astype(mxu_dtype)      # cast once; stays VMEM-resident
    bias_row = b_full.reshape(1, C_pad)
    mask_row = None if blank_mask is None else blank_mask.reshape(1, C_pad)

    # ---- Row tiling: flatten (T, N); no jnp.pad / out[:M]. Pallas handles the
    # ragged last block (reads padded, OOB writes dropped; the op is row-wise).
    M = T * N
    x2 = x.reshape(M, D)

    x_b = jnp.dtype(x.dtype).itemsize
    w_b = jnp.dtype(w_full.dtype).itemsize
    o_b = jnp.dtype(out_dtype).itemsize

    def vmem_estimate(tb):
        stream = 2 * tb * (D * x_b + C_pad * o_b)        # double-buffered x / out tiles
        resident = 2 * D * C_pad * w_b + 4 * C_pad * 4   # weights (worst case 2 bufs) + rows
        return stream + resident

    TB = max(8, min(_round_up(block_rows, 8), _round_up(M, 8)))
    while TB > 8 and vmem_estimate(TB) > vmem_budget_bytes:
        TB = max(8, _round_up(TB // 2, 8))
    n_tiles = pl.cdiv(M, TB)
    # v7x shards the single "parallel" axis over 2 TensorCores: prefer an even
    # tile count so neither core idles on a tail tile (no effect on v5e/v6e).
    if n_tiles % 2 == 1:
        cand = _round_up(pl.cdiv(M, n_tiles + 1), 8)
        if cand >= 8 and pl.cdiv(M, cand) % 2 == 0:
            TB = cand
            n_tiles = pl.cdiv(M, TB)

    vmem_limit = int(max(32 << 20, min(vmem_estimate(TB) + (4 << 20), 40 << 20)))

    kernel = functools.partial(
        _crf_kernel,
        activation=activation,
        scale=scale,
        blank_score=(blank_score if expand else None),
        mxu_dtype=mxu_dtype,
    )

    def build_and_call(single_buffer_residents):
        def resident_spec(shape):
            if single_buffer_residents:
                return pl.BlockSpec(shape, lambda i: (0,) * len(shape),
                                    pipeline_mode=pl.Buffered(1))
            return pl.BlockSpec(shape, lambda i: (0,) * len(shape))

        in_specs = [pl.BlockSpec((TB, D), lambda i: (i, 0)),   # x rows (streamed)
                    resident_spec((D, C_pad)),                 # folded weights
                    resident_spec((1, C_pad))]                 # bias row
        operands = [x2, w_full, bias_row]
        if mask_row is not None:
            in_specs.append(resident_spec((1, C_pad)))         # blank-lane mask
            operands.append(mask_row)

        grid_spec = pltpu.PrefetchScalarGridSpec(
            num_scalar_prefetch=0,
            grid=(n_tiles,),
            in_specs=in_specs,
            out_specs=pl.BlockSpec((TB, C_pad), lambda i: (i, 0)),
        )
        return pl.pallas_call(
            kernel,
            out_shape=jax.ShapeDtypeStruct((M, C_pad), out_dtype),
            grid_spec=grid_spec,
            compiler_params=pltpu.CompilerParams(
                dimension_semantics=("parallel",),  # fully parallel over row tiles
                vmem_limit_bytes=vmem_limit,
            ),
        )(*operands)

    try:
        # Grid-invariant operands don't need double buffering; halves their VMEM.
        out = build_and_call(True)
    except Exception:
        # Fallback in case the installed Pallas lowering rejects Buffered(1).
        out = build_and_call(False)

    if C_pad != C_out:
        out = out[:, :C_out]
    return out.reshape(T, N, C_out)


# --------------------------- pure-JAX reference -------------------------------


def linear_crf_encoder_reference(x, weight_t, bias, *, n_base, activation,
                                 scale, blank_score, expand_blanks=True,
                                 mxu_dtype=None):
    w = weight_t if mxu_dtype is None else weight_t.astype(mxu_dtype)
    xx = x if mxu_dtype is None else x.astype(mxu_dtype)
    scores = jnp.dot(xx, w, preferred_element_type=jnp.float32)
    if bias is not None:
        scores = scores + bias
    if activation == "tanh":
        scores = jnp.tanh(scores)
    if scale is not None:
        scores = scores * scale
    if blank_score is not None and expand_blanks:
        T, N, C = scores.shape
        scores = scores.reshape(T, N, C // n_base, n_base)
        pad = jnp.full(scores.shape[:-1] + (1,), blank_score, scores.dtype)
        scores = jnp.concatenate([pad, scores], axis=-1).reshape(T, N, -1)
    return scores


# --------------------------- demo / test --------------------------------------


if __name__ == "__main__":
    key = jax.random.PRNGKey(0)
    k_x, k_w, k_b, k_w2, k_b2 = jax.random.split(key, 5)

    # bonito-style config at small shapes:
    # n_base=4, state_len=2, activation='tanh', scale=5.0, blank_score=2.0
    T, N, D = 8, 2, 64
    n_base, state_len = 4, 2
    activation, scale, blank_score = "tanh", 5.0, 2.0

    x = jax.random.normal(k_x, (T, N, D), dtype=jnp.float32)

    # Case 1: blank_score set -> C = n_base**(state_len+1) = 64, expanded to 80.
    C = n_base ** (state_len + 1)
    weight = jax.random.normal(k_w, (C, D), jnp.float32) / jnp.sqrt(D)  # PyTorch (out,in)
    bias = 0.1 * jax.random.normal(k_b, (C,), jnp.float32)

    y = linear_crf_encoder_forward(x, weight.T, bias, n_base=n_base,
                                   activation=activation, scale=scale,
                                   blank_score=blank_score, expand_blanks=True)
    y = jax.block_until_ready(y)
    y_ref = linear_crf_encoder_reference(x, weight.T, bias, n_base=n_base,
                                         activation=activation, scale=scale,
                                         blank_score=blank_score,
                                         mxu_dtype=jnp.bfloat16)
    assert y.shape == (T, N, (C // n_base) * (n_base + 1)), y.shape
    assert jnp.allclose(y, y_ref, atol=2e-3, rtol=2e-3), "mismatch (expand path)"

    # Case 2: blank_score=None -> C = (n_base+1)*n_base**state_len = 80, no expansion.
    C2 = (n_base + 1) * n_base ** state_len
    weight2 = jax.random.normal(k_w2, (C2, D), jnp.float32) / jnp.sqrt(D)
    bias2 = 0.1 * jax.random.normal(k_b2, (C2,), jnp.float32)

    y2 = linear_crf_encoder_forward(x, weight2.T, bias2, n_base=n_base,
                                    activation=activation, scale=scale,
                                    blank_score=None)
    y2 = jax.block_until_ready(y2)
    y2_ref = linear_crf_encoder_reference(x, weight2.T, bias2, n_base=n_base,
                                          activation=activation, scale=scale,
                                          blank_score=None,
                                          mxu_dtype=jnp.bfloat16)
    assert y2.shape == (T, N, C2), y2.shape
    assert jnp.allclose(y2, y2_ref, atol=2e-3, rtol=2e-3), "mismatch (plain path)"

    print("KERNEL_OK")
</pallas_src>

<mosaic_0001>
module attributes {stable_mosaic.version = 11 : i64} {
  func.func @_crf_kernel(%arg0: i32, %arg1: memref<8x64xf32, #tpu.memory_space<vmem>>, %arg2: memref<64x128xbf16, #tpu.memory_space<vmem>>, %arg3: memref<1x128xf32, #tpu.memory_space<vmem>>, %arg4: memref<1x128xf32, #tpu.memory_space<vmem>>, %arg5: memref<8x128xf32, #tpu.memory_space<vmem>>) attributes {dimension_semantics = [#tpu.dimension_semantics<parallel>], iteration_bounds = array<i64: 2>, scalar_prefetch = 0 : i64, scratch_operands = 0 : i64, tpu.core_type = #tpu.core_type<tc>, window_params = [{transform_indices = @transform_0, window_bounds = array<i64: 8, 64>}, {pipeline_mode = #tpu.pipeline_mode<synchronous>, transform_indices = @transform_1, window_bounds = array<i64: 64, 128>}, {pipeline_mode = #tpu.pipeline_mode<synchronous>, transform_indices = @transform_2, window_bounds = array<i64: 1, 128>}, {pipeline_mode = #tpu.pipeline_mode<synchronous>, transform_indices = @transform_3, window_bounds = array<i64: 1, 128>}, {transform_indices = @transform_4, window_bounds = array<i64: 8, 128>}]} {
    %c0 = arith.constant 0 : index
    %c0_0 = arith.constant 0 : index
    %0 = vector.load %arg1[%c0, %c0_0] : memref<8x64xf32, #tpu.memory_space<vmem>>, vector<8x64xf32>
    %1 = arith.truncf %0 : vector<8x64xf32> to vector<8x64xbf16>
    %c0_1 = arith.constant 0 : index
    %c0_2 = arith.constant 0 : index
    %2 = vector.load %arg2[%c0_1, %c0_2] : memref<64x128xbf16, #tpu.memory_space<vmem>>, vector<64x128xbf16>
    %cst = arith.constant dense<0.000000e+00> : vector<8x128xf32>
    %3 = tpu.matmul %1, %2, %cst {dimension_numbers = #tpu.dot_dimension_numbers<[1], [0], [0], [1], [0, 0, 1, 1], [], []>} : vector<8x64xbf16>, vector<64x128xbf16>, vector<8x128xf32> -> vector<8x128xf32>
    %c0_3 = arith.constant 0 : index
    %c0_4 = arith.constant 0 : index
    %4 = vector.load %arg3[%c0_3, %c0_4] : memref<1x128xf32, #tpu.memory_space<vmem>>, vector<1x128xf32>
    %5 = vector.broadcast %4 : vector<1x128xf32> to vector<8x128xf32>
    %6 = arith.addf %3, %5 : vector<8x128xf32>
    %7 = math.tanh %6 : vector<8x128xf32>
    %cst_5 = arith.constant 5.000000e+00 : f32
    %8 = vector.broadcast %cst_5 : f32 to vector<8x128xf32>
    %9 = arith.mulf %7, %8 : vector<8x128xf32>
    %c0_6 = arith.constant 0 : index
    %c0_7 = arith.constant 0 : index
    %10 = vector.load %arg4[%c0_6, %c0_7] : memref<1x128xf32, #tpu.memory_space<vmem>>, vector<1x128xf32>
    %cst_8 = arith.constant 0.000000e+00 : f32
    %11 = vector.broadcast %cst_8 : f32 to vector<1x128xf32>
    %12 = arith.cmpf one, %10, %11 : vector<1x128xf32>
    %cst_9 = arith.constant 2.000000e+00 : f32
    %13 = vector.shape_cast %12 : vector<1x128xi1> to vector<1x128xi1>
    %14 = vector.broadcast %13 : vector<1x128xi1> to vector<8x128xi1>
    %15 = vector.broadcast %cst_9 : f32 to vector<8x128xf32>
    %16 = arith.select %14, %15, %9 : vector<8x128xi1>, vector<8x128xf32>
    %c0_10 = arith.constant 0 : index
    %c0_11 = arith.constant 0 : index
    %17 = vector.load %arg5[%c0_10, %c0_11] : memref<8x128xf32, #tpu.memory_space<vmem>>, vector<8x128xf32>
    tpu.vector_store %arg5[%c0_10, %c0_11], %16 {strides = array<i32>} : memref<8x128xf32, #tpu.memory_space<vmem>>, vector<8x128xf32>,
    return
  }
  func.func @transform_0(%arg0: i32) -> (i32, i32) {
    %c0_i32 = arith.constant 0 : i32
    %c0_i32_0 = arith.constant 0 : i32
    return %arg0, %c0_i32 : i32, i32
  }
  func.func @transform_1(%arg0: i32) -> (i32, i32) {
    %c0_i32 = arith.constant 0 : i32
    %c0_i32_0 = arith.constant 0 : i32
    %c0_i32_1 = arith.constant 0 : i32
    return %c0_i32, %c0_i32_0 : i32, i32
  }
  func.func @transform_2(%arg0: i32) -> (i32, i32) {
    %c0_i32 = arith.constant 0 : i32
    %c0_i32_0 = arith.constant 0 : i32
    %c0_i32_1 = arith.constant 0 : i32
    return %c0_i32, %c0_i32_0 : i32, i32
  }
  func.func @transform_3(%arg0: i32) -> (i32, i32) {
    %c0_i32 = arith.constant 0 : i32
    %c0_i32_0 = arith.constant 0 : i32
    %c0_i32_1 = arith.constant 0 : i32
    return %c0_i32, %c0_i32_0 : i32, i32
  }
  func.func @transform_4(%arg0: i32) -> (i32, i32) {
    %c0_i32 = arith.constant 0 : i32
    %c0_i32_0 = arith.constant 0 : i32
    return %arg0, %c0_i32 : i32, i32
  }
}

module attributes {stable_mosaic.version = 11 : i64} {
  func.func @_crf_kernel(%arg0: i32, %arg1: memref<8x64xf32, #tpu.memory_space<vmem>>, %arg2: memref<64x128xbf16, #tpu.memory_space<vmem>>, %arg3: memref<1x128xf32, #tpu.memory_space<vmem>>, %arg4: memref<1x128xf32, #tpu.memory_space<vmem>>, %arg5: memref<8x128xf32, #tpu.memory_space<vmem>>) attributes {dimension_semantics = [#tpu.dimension_semantics<parallel>], iteration_bounds = array<i64: 2>, scalar_prefetch = 0 : i64, scratch_operands = 0 : i64, tpu.core_type = #tpu.core_type<tc>, window_params = [{transform_indices = @transform_0, window_bounds = array<i64: 8, 64>}, {pipeline_mode = #tpu.pipeline_mode<synchronous>, transform_indices = @transform_1, window_bounds = array<i64: 64, 128>}, {pipeline_mode = #tpu.pipeline_mode<synchronous>, transform_indices = @transform_2, window_bounds = array<i64: 1, 128>}, {pipeline_mode = #tpu.pipeline_mode<synchronous>, transform_indices = @transform_3, window_bounds = array<i64: 1, 128>}, {transform_indices = @transform_4, window_bounds = array<i64: 8, 128>}]} {
    %c0 = arith.constant 0 : index
    %c0_0 = arith.constant 0 : index
    %0 = vector.load %arg1[%c0, %c0_0] : memref<8x64xf32, #tpu.memory_space<vmem>>, vector<8x64xf32>
    %1 = arith.truncf %0 : vector<8x64xf32> to vector<8x64xbf16>
    %c0_1 = arith.constant 0 : index
    %c0_2 = arith.constant 0 : index
    %2 = vector.load %arg2[%c0_1, %c0_2] : memref<64x128xbf16, #tpu.memory_space<vmem>>, vector<64x128xbf16>
    %cst = arith.constant dense<0.000000e+00> : vector<8x128xf32>
    %3 = tpu.matmul %1, %2, %cst {dimension_numbers = #tpu.dot_dimension_numbers<[1], [0], [0], [1], [0, 0, 1, 1], [], []>} : vector<8x64xbf16>, vector<64x128xbf16>, vector<8x128xf32> -> vector<8x128xf32>
    %c0_3 = arith.constant 0 : index
    %c0_4 = arith.constant 0 : index
    %4 = vector.load %arg3[%c0_3, %c0_4] : memref<1x128xf32, #tpu.memory_space<vmem>>, vector<1x128xf32>
    %5 = vector.broadcast %4 : vector<1x128xf32> to vector<8x128xf32>
    %6 = arith.addf %3, %5 : vector<8x128xf32>
    %7 = math.tanh %6 : vector<8x128xf32>
    %cst_5 = arith.constant 5.000000e+00 : f32
    %8 = vector.broadcast %cst_5 : f32 to vector<8x128xf32>
    %9 = arith.mulf %7, %8 : vector<8x128xf32>
    %c0_6 = arith.constant 0 : index
    %c0_7 = arith.constant 0 : index
    %10 = vector.load %arg4[%c0_6, %c0_7] : memref<1x128xf32, #tpu.memory_space<vmem>>, vector<1x128xf32>
    %cst_8 = arith.constant 0.000000e+00 : f32
    %11 = vector.broadcast %cst_8 : f32 to vector<1x128xf32>
    %12 = arith.cmpf one, %10, %11 : vector<1x128xf32>
    %cst_9 = arith.constant 2.000000e+00 : f32
    %13 = vector.shape_cast %12 : vector<1x128xi1> to vector<1x128xi1>
    %14 = vector.broadcast %13 : vector<1x128xi1> to vector<8x128xi1>
    %15 = vector.broadcast %cst_9 : f32 to vector<8x128xf32>
    %16 = arith.select %14, %15, %9 : vector<8x128xi1>, vector<8x128xf32>
    %c0_10 = arith.constant 0 : index
    %c0_11 = arith.constant 0 : index
    %17 = vector.load %arg5[%c0_10, %c0_11] : memref<8x128xf32, #tpu.memory_space<vmem>>, vector<8x128xf32>
    tpu.vector_store %arg5[%c0_10, %c0_11], %16 {strides = array<i32>} : memref<8x128xf32, #tpu.memory_space<vmem>>, vector<8x128xf32>,
    return
  }
  func.func @transform_0(%arg0: i32) -> (i32, i32) {
    %c0_i32 = arith.constant 0 : i32
    %c0_i32_0 = arith.constant 0 : i32
    return %arg0, %c0_i32 : i32, i32
  }
  func.func @transform_1(%arg0: i32) -> (i32, i32) {
    %c0_i32 = arith.constant 0 : i32
    %c0_i32_0 = arith.constant 0 : i32
    %c0_i32_1 = arith.constant 0 : i32
    return %c0_i32, %c0_i32_0 : i32, i32
  }
  func.func @transform_2(%arg0: i32) -> (i32, i32) {
    %c0_i32 = arith.constant 0 : i32
    %c0_i32_0 = arith.constant 0 : i32
    %c0_i32_1 = arith.constant 0 : i32
    return %c0_i32, %c0_i32_0 : i32, i32
  }
  func.func @transform_3(%arg0: i32) -> (i32, i32) {
    %c0_i32 = arith.constant 0 : i32
    %c0_i32_0 = arith.constant 0 : i32
    %c0_i32_1 = arith.constant 0 : i32
    return %c0_i32, %c0_i32_0 : i32, i32
  }
  func.func @transform_4(%arg0: i32) -> (i32, i32) {
    %c0_i32 = arith.constant 0 : i32
    %c0_i32_0 = arith.constant 0 : i32
    return %arg0, %c0_i32 : i32, i32
  }
}

</mosaic_0001>

<bundles_post_ra>
// kernel: tpu_custom_call.1
= control target key start
LH: loop header
LB: loop body
LE: loop exit
PB: predicated region body
PF: predicated region fallthrough
CT: control target
= control target key end

     0   :  { %9 = vsyncpa [#allocation3], 0  ;;  %s894_s0 = inlined_call_operand.hbm [shape: f32[16,64], index: 0, kind: input, shape index: {}]   ;;  %s895_s1 = inlined_call_operand.hbm [shape: bf16[64,128], index: 1, kind: input, shape index: {}]   ;;  %s896_s2 = inlined_call_operand.vmem [shape: f32[1,128], index: 2, kind: input, shape index: {}]   ;;  %s897_s3 = inlined_call_operand.vmem [shape: f32[1,128], index: 3, kind: input, shape index: {}]   ;;  %s898_s4 = inlined_call_operand.hbm [shape: f32[16,128], index: 4, kind: output, shape index: {}]  }
   0x1   :  { %11 = vsyncpa [#allocation3 + $0x1], 0 }
   0x2   :  { %12 = vsyncpa [#allocation6], 0 }
   0x3   :  { %13 = vsyncpa [#allocation4], 0 }
   0x4   :  { %15 = vsyncpa [#allocation4 + $0x1], 0  ;;  %s688_s15 = smov 0   ;;  %s690_s16 = smov 0  }
   0x5   :  { %s692_s17 = smov 0   ;;  %s694_s18 = smov 0  }
   0x6 LB: > { %s709_s19 = sadd.s32 4294967295, %s653_s18   ;;  %s420_s20 = sadd.s32 4294967294, %s653_s18   ;;  %s653_s18 = sphi %s694_s18, %s918_s18   ;;  %s649_s17 = sphi %s692_s17, %s917_s17   ;;  %s645_s16 = sphi %s690_s16, %s916_s16   ;;  %s641_s15 = sphi %s688_s15, %s915_s15  }
   0x7   : > { %p41_p0 = scmp.ne.s32.totalorder %s645_s16, %s641_s15  ;;  %p899_p1 = scmp.eq.s32.totalorder %s709_s19, 0 }
   0x8   : > { %p134_p3 = scmp.eq.s32.totalorder %s420_s20, 1  ;;  %p421_p5 = scmp.ge.s32.totalorder %s653_s18, 1 }
   0x9   : > { %p718_p4 = por %p899_p1, %p41_p0  ;;  %p141_p7 = scmp.lt.s32.totalorder %s653_s18, 3 }
   0xa   : > { %p723_p6 = por %p134_p3, %p41_p0  ;;  %s655_s24 = smov [#allocation5]  }
   0xb   : > { %s902_s21 = scalar_select %p718_p4, 1, 0 }
   0xc   : > { %s903_s22 = scalar_select %p723_p6, 1, 0 }
   0xd   : > { %p728_p8 = pnand %p421_p5, %p141_p7  ;;  %s153_s25 = sshll.u32 %s655_s24, 4  ;;  %s732_s25 = int_to_ptr.vmem [resolvable:$true] %s153_s25 }
   0xe   : > { %s744_s27 = sadd.s32 1, %s653_s18   ;;  %s28_s28 = sadd.s32 1, %s649_s17 }
   0xf   : > { %s904_s23 = scalar_select %p728_p8, 1, 0 }
  0x10   : > { %p465_p9 = pneg %p728_p8  ;;  %s25_s29 = ssub.s32 %s653_s18, %s744_s27 }
  0x11   : > { %s525_s6 = scalar_lea.hbm %s895_s1, 512 }
  0x12   : > { %p739_p11 = pnand %p465_p9, %p899_p1  ;;  %p526_p12 = scmp.ne.s32.totalorder %s895_s1, %s525_s6 }
  0x13   : > { %p532_p5 = scmp.lt.u32.totalorder %s525_s6, %s895_s1 }
  0x14   : > { %p527_p13 = pneg %p739_p11 }
  0x16   : > { %p528_p0 = pnand %p527_p13, %p526_p12 }
  0x18   : > { %p529_p3 = pneg %p528_p0 }
  0x1a   : > { %p534_p7 = pnand %p532_p5, %p529_p3 }
  0x1c   : > { %537 = shalt.err (!%p534_p7)
}
  0x1d   : > { %s538_s11 = scalar_lea.vmem %s732_s25, 512  ;;  %p546_p2 = scmp.lt.s32.totalorder %s732_s25, %s732_s25 }
  0x1e   : > { %p539_p9 = scmp.ne.s32.totalorder %s732_s25, %s538_s11  ;;  %p547_p6 = scmp.lt.s32.totalorder %s538_s11, %s538_s11 }
  0x20   : > { %p541_p10 = pnand %p539_p9, %p527_p13  ;;  %p548_p4 = por %p547_p6, %p546_p2 }
  0x22   : > { %p542_p1 = pneg %p541_p10 }
  0x24   : > { %p549_p8 = pnand %p548_p4, %p542_p1 }
  0x26   : > { %552 = shalt.err (!%p549_p8)
}
  0x27   : > { %s656_s12 = smov 64   ;;  %s657_s13 = smov 4  }
  0x28   : > { %468 = dma.hbm_to_vmem [thread:$0]  (!%p739_p11), %s895_s1, 512, %s732_s25, [#allocation6], %s656_s12, %s656_s12, %s657_s13  }
  0x29   : > { %p26_p2 = scmp.eq.s32.totalorder %s25_s29, 0  ;;  %p35_p1 = scmp.ne.s32.totalorder %s649_s17, %s645_s16 }
  0x2a   : > { %p36_p4 = scmp.eq.s32.totalorder %s653_s18, 0  ;;  %p478_p6 = scmp.lt.s32.totalorder %s653_s18, 2 }
  0x2b   : > { %s775_s24 = scalar_select %p26_p2, %s649_s17, %s28_s28  }
  0x2c   : > { %p37_p8 = por %p36_p4, %p35_p1  ;;  %p906_p10 = scmp.eq.s32.totalorder %s709_s19, 1 }
  0x2d   : > { %s173_s5 = sand.u32 1, %s649_s17   ;;  %s425_s6 = sshll.u32 %s653_s18, 7 }
  0x2e   : > { %p779_p12 = por %p906_p10, %p35_p1  ;;  %s424_s7 = sshll.u32 %s173_s5, 3 }
  0x2f   : > { %s788_s9 = scalar_lea.hbm %s894_s0, %s425_s6  ;;  %s177_s25 = scalar_lea.vmem [#allocation2], %s424_s7 }
  0x30   : > { %s184_s28 = sshll.u32 %s177_s25, 4  ;;  %p790_p11 = pnand %p478_p6, %p37_p8  ;;  %s794_s28 = int_to_ptr.vmem [resolvable:$true] %s184_s28 }
  0x31   : > { %s174_s10 = scalar_lea.sflag [#allocation3], %s173_s5  ;;  %s553_s11 = scalar_lea.hbm %s788_s9, 128 }
  0x32   : > { %p554_p13 = scmp.ne.s32.totalorder %s788_s9, %s553_s11  ;;  %p555_p0 = pneg %p790_p11 }
  0x33   : > { %s558_s14 = scalar_lea.hbm %s894_s0, 256  ;;  %p559_p7 = scmp.lt.u32.totalorder %s788_s9, %s894_s0 }
  0x34   : > { %p556_p3 = pnand %p555_p0, %p554_p13  ;;  %p560_p9 = scmp.lt.u32.totalorder %s558_s14, %s553_s11 }
  0x35   : > { %p562_p1 = scmp.lt.u32.totalorder %s553_s11, %s788_s9 }
  0x36   : > { %p557_p5 = pneg %p556_p3  ;;  %p561_p2 = por %p560_p9, %p559_p7 }
  0x38   : > { %p563_p4 = por %p562_p1, %p561_p2 }
  0x3a   : > { %p564_p6 = pnand %p563_p4, %p557_p5 }
  0x3c   : > { %567 = shalt.err (!%p564_p6)
}
  0x3d   : > { %s568_s5 = scalar_lea.vmem %s794_s28, 128  ;;  %s658_s7 = smov [#allocation2]  }
  0x3e   : > { %p569_p8 = scmp.ne.s32.totalorder %s794_s28, %s568_s5  ;;  %s573_s26 = sshll.u32 %s658_s7, 4  ;;  %s574_s26 = int_to_ptr.vmem [resolvable:$false] %s573_s26 }
  0x3f   : > { %s575_s8 = scalar_lea.vmem %s574_s26, 256  ;;  %p576_p3 = scmp.lt.s32.totalorder %s794_s28, %s574_s26 }
  0x40   : > { %p571_p10 = pnand %p569_p8, %p555_p0  ;;  %p577_p7 = scmp.lt.s32.totalorder %s575_s8, %s568_s5 }
  0x42   : > { %p572_p13 = pneg %p571_p10  ;;  %p578_p9 = por %p577_p7, %p576_p3 }
  0x44   : > { %p579_p2 = pnand %p578_p9, %p572_p13 }
  0x46   : > { %582 = shalt.err (!%p579_p2)
}
  0x47   : > { %472 = dma.hbm_to_vmem [thread:$0]  (!%p790_p11), %s788_s9, 128, %s794_s28, %s174_s10  }
  0x48   : > { %p909_p5 = scmp.ne.s32.totalorder %s904_s23, 0 }
  0x49   : > { %s824_s25 = sand.u32 (!%p909_p5), 1, %s645_s16   ;;  %p910_p0 = scmp.ne.s32.totalorder (!%p909_p5), %s902_s21, 0 }
  0x4a   : > { %193 = sbr.rel (%p909_p5) target bundleno = 344 (0x158), region = 36  ;;  %s427_s11 = sshll.u32 (!%p909_p5), %s824_s25, 3 }
  0x4b   : > { %s196_s12 = scalar_lea.sflag (!%p909_p5), [#allocation3], %s824_s25  ;;  %s199_s13 = scalar_lea.vmem (!%p909_p5), [#allocation2], %s427_s11 }
  0x51   : > { %628 = dma.done.wait (%p910_p0), %s196_s12, 128  }
  0x52   : > { %630 = vsyncadd (%p910_p0), %s196_s12, 4294967168  ;;  %p911_p11 = scmp.eq.s32.totalorder %s709_s19, 0 }
  0x54   : > { %632 = dma.done.wait (%p911_p11), [#allocation6], 512   ;;  %p912_p1 = pmov %p911_p11 }
  0x55   : > { %v659_v0 = vmov 0.0   ;;  %vm660_vm0 = vmmov 0   ;;  %v519_v1 = vld [vmem:[#allocation5] sm:$0xff]   ;;  %v520_v2 = vld [vmem:[#allocation5 + $0x8] sm:$0xff]   ;;  %v521_v3 = vld [vmem:[#allocation5 + $0x10] sm:$0xff]   ;;  %vm270_vm1 = vcmask 523264   ;;  %v319_v7 = vlaneseq }
  0x56   : > { %634 = vsyncadd (%p912_p1), [#allocation6], 4294966784  ;;  %445 = vmatprep.subr.bf16.mxu0 %v659_v0  ;;  %453 = vmatprep.mubr.msk.bf16.mxu0 %vm660_vm0, %v659_v0  ;;  %v522_v4 = vld [vmem:[#allocation5 + $0x18] sm:$0xff]   ;;  %v430_v8 = vld [vmem:[%s896_s2] ss:$0 sm:$0xff]  ;;  %v661_v17 = vmov 0  }
  0x57   : > { %446 = vmatpush3.bf16.msra.mxu0 %v519_v1  ;;  %v229_v5 = vld [vmem:[%s199_s13] sm:$0xff]  ;;  %v320_v12 = vshrl.u32 %v319_v7, 7  ;;  %s437_s29 = sshll.u32 %s709_s19, 7  ;;  %s227_s10 = scalar_lea.vmem [#allocation7], %s427_s11 }
  0x58   : > { %447 = vmatprep.subr.bf16.mxu0 %v659_v0  ;;  %v230_v6 = vpack.c.bf16 %v229_v5, %v229_v5  ;;  %v316_v10 = vld [vmem:[%s897_s3] sm:$0x1]  ;;  %s340_s14 = sshll.u32 %s227_s10, 4  ;;  %s850_s5 = scalar_lea.hbm %s898_s4, %s437_s29  ;;  %s852_s14 = int_to_ptr.vmem [resolvable:$true] %s340_s14 }
  0x59   : > { %vm317_vm2 = vcmp.ne.f32.partialorder %v316_v10, 0.0  ;;  %v321_v16 = vsub.s32 0, %v320_v12  ;;  %s327_s7 = scalar_lea.sflag [#allocation4], %s824_s25  ;;  %s583_s19 = scalar_lea.vmem %s852_s14, 128 }
  0x5a   : > { %v318_v18 = vsel %vm317_vm2, 1, %v661_v17  ;;  %p584_p4 = scmp.ne.s32.totalorder %s852_s14, %s583_s19  ;;  %s662_s26 = smov [#allocation7]  }
  0x5b   : > { %448 = vmatpush3.bf16.msra.mxu0 %v520_v2  ;;  %v322_v19 = vrot.slane %v318_v18, %v321_v16  ;;  %s587_s8 = sshll.u32 %s662_s26, 4  ;;  %s588_s8 = int_to_ptr.vmem [resolvable:$false] %s587_s8 }
  0x5c   : > { %449 = vmatprep.subr.bf16.mxu0 %v659_v0  ;;  %p585_p6 = pnand %p584_p4, %p779_p12  ;;  %s589_s11 = scalar_lea.vmem %s588_s8, 256 }
  0x5d   : > { %vm323_vm3 = vcmp.eq.s32.totalorder %v322_v19, 1  ;;  %p590_p10 = scmp.lt.s32.totalorder %s852_s14, %s588_s8  ;;  %p591_p13 = scmp.lt.s32.totalorder %s589_s11, %s583_s19 }
  0x5e   : > { %p586_p8 = pneg %p585_p6 }
  0x5f   : > { %450 = vmatpush3.bf16.msra.mxu0 %v521_v3  ;;  %p592_p3 = por %p591_p13, %p590_p10 }
  0x60   : > { %451 = vmatprep.subr.bf16.mxu0 %v659_v0 }
  0x61   : > { %p593_p7 = pnand %p592_p3, %p586_p8 }
  0x63   : > { %452 = vmatpush3.bf16.msra.mxu0 %v522_v4 }
  0x66   : > { %454 = vmatmul.mubr.msk.bf16.vlgmr.msra.gmra.mrb[0].mxu0 %vm270_vm1, %v230_v6 }
 0x139   : > { %v308_v9 = vpop.f32.mrb[0].mxu0 }
 0x13a   : > { %v309_v11 = vadd.f32 %v430_v8, %v308_v9  ;;  %v455_v13 = vpop.f32.mrb[1].mxu0 }
 0x13b   : > { %v311_v14 = vpop.f32.mrb[2].mxu0 }
 0x13c   : > { %523 = vtanh.f32 %v309_v11  ;;  %v456_v15 = vpop.f32.mrb[3].mxu0 }
 0x146   : > { %v524_v20 = vpop.eup %523 }
 0x147   : > { %v315_v21 = vmul.f32 5.0, %v524_v20 }
 0x149   : > { %v324_v22 = vsel %vm323_vm3, 2.0, %v315_v21 }
 0x14a   : > { %325 = vst [vmem:[%s227_s10] sm:$0xff] %v324_v22 }
 0x14b   : > { %596 = shalt.err (!%p593_p7)
}
 0x14c   : > { %s597_s25 = scalar_lea.hbm %s850_s5, 128  ;;  %s601_s21 = scalar_lea.hbm %s898_s4, 256 }
 0x14d   : > { %p598_p9 = scmp.ne.s32.totalorder %s850_s5, %s597_s25  ;;  %p602_p0 = scmp.lt.u32.totalorder %s850_s5, %s898_s4 }
 0x14e   : > { %p603_p11 = scmp.lt.u32.totalorder %s601_s21, %s597_s25  ;;  %p605_p4 = scmp.lt.u32.totalorder %s597_s25, %s850_s5 }
 0x14f   : > { %p599_p2 = pnand %p598_p9, %p779_p12 }
 0x150   : > { %p604_p1 = por %p603_p11, %p602_p0 }
 0x151   : > { %p600_p5 = pneg %p599_p2 }
 0x152   : > { %p606_p6 = por %p605_p4, %p604_p1 }
 0x154   : > { %p607_p8 = pnand %p606_p6, %p600_p5 }
 0x156   : > { %610 = shalt.err (!%p607_p8)
}
 0x157   : > { %463 = dma.vmem_to_hbm [thread:$0]  (%p779_p12), %s852_s14, 128, %s850_s5, %s327_s7  }
 0x158 PF: > { %s352_s28 = sand.u32 1, %s641_s15   ;;  %p913_p10 = scmp.ne.s32.totalorder %s903_s22, 0 }
 0x159   : > { %p914_p13 = scmp.ge.s32.totalorder %s653_s18, 2  ;;  %s353_s29 = scalar_lea.sflag [#allocation4], %s352_s28 }
 0x15b   : > { %p474_p3 = pnand %p914_p13, %p913_p10 }
 0x15d   : > { %636 = dma.done.wait (!%p474_p3), %s353_s29, 128  }
 0x15e   : > { %638 = vsyncadd (!%p474_p3), %s353_s29, 4294967168  ;;  %p18_p7 = scmp.ge.s32.totalorder %s744_s27, 4   ;;  %s915_s15 = smov %s645_s16 }
 0x15f   : > { %s916_s16 = smov %s649_s17  ;;  %s917_s17 = smov %s775_s24 }
 0x160   : > { %s918_s18 = smov %s744_s27  ;;  %20 = sbr.rel (!%p18_p7) target bundleno = 6 (0x6), region = 85 }
 0x167   :  { %358 = vsyncpa [#allocation3], 1 }
 0x168   :  { %360 = vsyncpa [#allocation3 + $0x1], 1 }
 0x169   :  { %361 = vsyncpa [#allocation6], 1 }
 0x16a   :  { %362 = vsyncpa [#allocation4], 1 }
 0x16b   :  { %364 = vsyncpa [#allocation4 + $0x1], 1 }

// kernel: tpu_custom_call.1
= control target key start
LH: loop header
LB: loop body
LE: loop exit
PB: predicated region body
PF: predicated region fallthrough
CT: control target
= control target key end

     0   :  { %9 = vsyncpa [#allocation3], 0  ;;  %s894_s0 = inlined_call_operand.hbm [shape: f32[16,64], index: 0, kind: input, shape index: {}]   ;;  %s895_s1 = inlined_call_operand.hbm [shape: bf16[64,128], index: 1, kind: input, shape index: {}]   ;;  %s896_s2 = inlined_call_operand.vmem [shape: f32[1,128], index: 2, kind: input, shape index: {}]   ;;  %s897_s3 = inlined_call_operand.vmem [shape: f32[1,128], index: 3, kind: input, shape index: {}]   ;;  %s898_s4 = inlined_call_operand.hbm [shape: f32[16,128], index: 4, kind: output, shape index: {}]  }
   0x1   :  { %11 = vsyncpa [#allocation3 + $0x1], 0 }
   0x2   :  { %12 = vsyncpa [#allocation6], 0 }
   0x3   :  { %13 = vsyncpa [#allocation4], 0 }
   0x4   :  { %15 = vsyncpa [#allocation4 + $0x1], 0  ;;  %s688_s15 = smov 0   ;;  %s690_s16 = smov 0  }
   0x5   :  { %s692_s17 = smov 0   ;;  %s694_s18 = smov 0  }
   0x6 LB: > { %s709_s19 = sadd.s32 4294967295, %s653_s18   ;;  %s420_s20 = sadd.s32 4294967294, %s653_s18   ;;  %s653_s18 = sphi %s694_s18, %s918_s18   ;;  %s649_s17 = sphi %s692_s17, %s917_s17   ;;  %s645_s16 = sphi %s690_s16, %s916_s16   ;;  %s641_s15 = sphi %s688_s15, %s915_s15  }
   0x7   : > { %p41_p0 = scmp.ne.s32.totalorder %s645_s16, %s641_s15  ;;  %p899_p1 = scmp.eq.s32.totalorder %s709_s19, 0 }
   0x8   : > { %p134_p3 = scmp.eq.s32.totalorder %s420_s20, 1  ;;  %p421_p5 = scmp.ge.s32.totalorder %s653_s18, 1 }
   0x9   : > { %p718_p4 = por %p899_p1, %p41_p0  ;;  %p141_p7 = scmp.lt.s32.totalorder %s653_s18, 3 }
   0xa   : > { %p723_p6 = por %p134_p3, %p41_p0  ;;  %s655_s24 = smov [#allocation5]  }
   0xb   : > { %s902_s21 = scalar_select %p718_p4, 1, 0 }
   0xc   : > { %s903_s22 = scalar_select %p723_p6, 1, 0 }
   0xd   : > { %p728_p8 = pnand %p421_p5, %p141_p7  ;;  %s153_s25 = sshll.u32 %s655_s24, 4  ;;  %s732_s25 = int_to_ptr.vmem [resolvable:$true] %s153_s25 }
   0xe   : > { %s744_s27 = sadd.s32 1, %s653_s18   ;;  %s28_s28 = sadd.s32 1, %s649_s17 }
   0xf   : > { %s904_s23 = scalar_select %p728_p8, 1, 0 }
  0x10   : > { %p465_p9 = pneg %p728_p8  ;;  %s25_s29 = ssub.s32 %s653_s18, %s744_s27 }
  0x11   : > { %s525_s6 = scalar_lea.hbm %s895_s1, 512 }
  0x12   : > { %p739_p11 = pnand %p465_p9, %p899_p1  ;;  %p526_p12 = scmp.ne.s32.totalorder %s895_s1, %s525_s6 }
  0x13   : > { %p532_p5 = scmp.lt.u32.totalorder %s525_s6, %s895_s1 }
  0x14   : > { %p527_p13 = pneg %p739_p11 }
  0x16   : > { %p528_p0 = pnand %p527_p13, %p526_p12 }
  0x18   : > { %p529_p3 = pneg %p528_p0 }
  0x1a   : > { %p534_p7 = pnand %p532_p5, %p529_p3 }
  0x1c   : > { %537 = shalt.err (!%p534_p7)
}
  0x1d   : > { %s538_s11 = scalar_lea.vmem %s732_s25, 512  ;;  %p546_p2 = scmp.lt.s32.totalorder %s732_s25, %s732_s25 }
  0x1e   : > { %p539_p9 = scmp.ne.s32.totalorder %s732_s25, %s538_s11  ;;  %p547_p6 = scmp.lt.s32.totalorder %s538_s11, %s538_s11 }
  0x20   : > { %p541_p10 = pnand %p539_p9, %p527_p13  ;;  %p548_p4 = por %p547_p6, %p546_p2 }
  0x22   : > { %p542_p1 = pneg %p541_p10 }
  0x24   : > { %p549_p8 = pnand %p548_p4, %p542_p1 }
  0x26   : > { %552 = shalt.err (!%p549_p8)
}
  0x27   : > { %s656_s12 = smov 64   ;;  %s657_s13 = smov 4  }
  0x28   : > { %468 = dma.hbm_to_vmem [thread:$0]  (!%p739_p11), %s895_s1, 512, %s732_s25, [#allocation6], %s656_s12, %s656_s12, %s657_s13  }
  0x29   : > { %p26_p2 = scmp.eq.s32.totalorder %s25_s29, 0  ;;  %p35_p1 = scmp.ne.s32.totalorder %s649_s17, %s645_s16 }
  0x2a   : > { %p36_p4 = scmp.eq.s32.totalorder %s653_s18, 0  ;;  %p478_p6 = scmp.lt.s32.totalorder %s653_s18, 2 }
  0x2b   : > { %s775_s24 = scalar_select %p26_p2, %s649_s17, %s28_s28  }
  0x2c   : > { %p37_p8 = por %p36_p4, %p35_p1  ;;  %p906_p10 = scmp.eq.s32.totalorder %s709_s19, 1 }
  0x2d   : > { %s173_s5 = sand.u32 1, %s649_s17   ;;  %s425_s6 = sshll.u32 %s653_s18, 7 }
  0x2e   : > { %p779_p12 = por %p906_p10, %p35_p1  ;;  %s424_s7 = sshll.u32 %s173_s5, 3 }
  0x2f   : > { %s788_s9 = scalar_lea.hbm %s894_s0, %s425_s6  ;;  %s177_s25 = scalar_lea.vmem [#allocation2], %s424_s7 }
  0x30   : > { %s184_s28 = sshll.u32 %s177_s25, 4  ;;  %p790_p11 = pnand %p478_p6, %p37_p8  ;;  %s794_s28 = int_to_ptr.vmem [resolvable:$true] %s184_s28 }
  0x31   : > { %s174_s10 = scalar_lea.sflag [#allocation3], %s173_s5  ;;  %s553_s11 = scalar_lea.hbm %s788_s9, 128 }
  0x32   : > { %p554_p13 = scmp.ne.s32.totalorder %s788_s9, %s553_s11  ;;  %p555_p0 = pneg %p790_p11 }
  0x33   : > { %s558_s14 = scalar_lea.hbm %s894_s0, 256  ;;  %p559_p7 = scmp.lt.u32.totalorder %s788_s9, %s894_s0 }
  0x34   : > { %p556_p3 = pnand %p555_p0, %p554_p13  ;;  %p560_p9 = scmp.lt.u32.totalorder %s558_s14, %s553_s11 }
  0x35   : > { %p562_p1 = scmp.lt.u32.totalorder %s553_s11, %s788_s9 }
  0x36   : > { %p557_p5 = pneg %p556_p3  ;;  %p561_p2 = por %p560_p9, %p559_p7 }
  0x38   : > { %p563_p4 = por %p562_p1, %p561_p2 }
  0x3a   : > { %p564_p6 = pnand %p563_p4, %p557_p5 }
  0x3c   : > { %567 = shalt.err (!%p564_p6)
}
  0x3d   : > { %s568_s5 = scalar_lea.vmem %s794_s28, 128  ;;  %s658_s7 = smov [#allocation2]  }
  0x3e   : > { %p569_p8 = scmp.ne.s32.totalorder %s794_s28, %s568_s5  ;;  %s573_s26 = sshll.u32 %s658_s7, 4  ;;  %s574_s26 = int_to_ptr.vmem [resolvable:$false] %s573_s26 }
  0x3f   : > { %s575_s8 = scalar_lea.vmem %s574_s26, 256  ;;  %p576_p3 = scmp.lt.s32.totalorder %s794_s28, %s574_s26 }
  0x40   : > { %p571_p10 = pnand %p569_p8, %p555_p0  ;;  %p577_p7 = scmp.lt.s32.totalorder %s575_s8, %s568_s5 }
  0x42   : > { %p572_p13 = pneg %p571_p10  ;;  %p578_p9 = por %p577_p7, %p576_p3 }
  0x44   : > { %p579_p2 = pnand %p578_p9, %p572_p13 }
  0x46   : > { %582 = shalt.err (!%p579_p2)
}
  0x47   : > { %472 = dma.hbm_to_vmem [thread:$0]  (!%p790_p11), %s788_s9, 128, %s794_s28, %s174_s10  }
  0x48   : > { %p909_p5 = scmp.ne.s32.totalorder %s904_s23, 0 }
  0x49   : > { %s824_s25 = sand.u32 (!%p909_p5), 1, %s645_s16   ;;  %p910_p0 = scmp.ne.s32.totalorder (!%p909_p5), %s902_s21, 0 }
  0x4a   : > { %193 = sbr.rel (%p909_p5) target bundleno = 344 (0x158), region = 36  ;;  %s427_s11 = sshll.u32 (!%p909_p5), %s824_s25, 3 }
  0x4b   : > { %s196_s12 = scalar_lea.sflag (!%p909_p5), [#allocation3], %s824_s25  ;;  %s199_s13 = scalar_lea.vmem (!%p909_p5), [#allocation2], %s427_s11 }
  0x51   : > { %628 = dma.done.wait (%p910_p0), %s196_s12, 128  }
  0x52   : > { %630 = vsyncadd (%p910_p0), %s196_s12, 4294967168  ;;  %p911_p11 = scmp.eq.s32.totalorder %s709_s19, 0 }
  0x54   : > { %632 = dma.done.wait (%p911_p11), [#allocation6], 512   ;;  %p912_p1 = pmov %p911_p11 }
  0x55   : > { %v659_v0 = vmov 0.0   ;;  %vm660_vm0 = vmmov 0   ;;  %v519_v1 = vld [vmem:[#allocation5] sm:$0xff]   ;;  %v520_v2 = vld [vmem:[#allocation5 + $0x8] sm:$0xff]   ;;  %v521_v3 = vld [vmem:[#allocation5 + $0x10] sm:$0xff]   ;;  %vm270_vm1 = vcmask 523264   ;;  %v319_v7 = vlaneseq }
  0x56   : > { %634 = vsyncadd (%p912_p1), [#allocation6], 4294966784  ;;  %445 = vmatprep.subr.bf16.mxu0 %v659_v0  ;;  %453 = vmatprep.mubr.msk.bf16.mxu0 %vm660_vm0, %v659_v0  ;;  %v522_v4 = vld [vmem:[#allocation5 + $0x18] sm:$0xff]   ;;  %v430_v8 = vld [vmem:[%s896_s2] ss:$0 sm:$0xff]  ;;  %v661_v17 = vmov 0  }
  0x57   : > { %446 = vmatpush3.bf16.msra.mxu0 %v519_v1  ;;  %v229_v5 = vld [vmem:[%s199_s13] sm:$0xff]  ;;  %v320_v12 = vshrl.u32 %v319_v7, 7  ;;  %s437_s29 = sshll.u32 %s709_s19, 7  ;;  %s227_s10 = scalar_lea.vmem [#allocation7], %s427_s11 }
  0x58   : > { %447 = vmatprep.subr.bf16.mxu0 %v659_v0  ;;  %v230_v6 = vpack.c.bf16 %v229_v5, %v229_v5  ;;  %v316_v10 = vld [vmem:[%s897_s3] sm:$0x1]  ;;  %s340_s14 = sshll.u32 %s227_s10, 4  ;;  %s850_s5 = scalar_lea.hbm %s898_s4, %s437_s29  ;;  %s852_s14 = int_to_ptr.vmem [resolvable:$true] %s340_s14 }
  0x59   : > { %vm317_vm2 = vcmp.ne.f32.partialorder %v316_v10, 0.0  ;;  %v321_v16 = vsub.s32 0, %v320_v12  ;;  %s327_s7 = scalar_lea.sflag [#allocation4], %s824_s25  ;;  %s583_s19 = scalar_lea.vmem %s852_s14, 128 }
  0x5a   : > { %v318_v18 = vsel %vm317_vm2, 1, %v661_v17  ;;  %p584_p4 = scmp.ne.s32.totalorder %s852_s14, %s583_s19  ;;  %s662_s26 = smov [#allocation7]  }
  0x5b   : > { %448 = vmatpush3.bf16.msra.mxu0 %v520_v2  ;;  %v322_v19 = vrot.slane %v318_v18, %v321_v16  ;;  %s587_s8 = sshll.u32 %s662_s26, 4  ;;  %s588_s8 = int_to_ptr.vmem [resolvable:$false] %s587_s8 }
  0x5c   : > { %449 = vmatprep.subr.bf16.mxu0 %v659_v0  ;;  %p585_p6 = pnand %p584_p4, %p779_p12  ;;  %s589_s11 = scalar_lea.vmem %s588_s8, 256 }
  0x5d   : > { %vm323_vm3 = vcmp.eq.s32.totalorder %v322_v19, 1  ;;  %p590_p10 = scmp.lt.s32.totalorder %s852_s14, %s588_s8  ;;  %p591_p13 = scmp.lt.s32.totalorder %s589_s11, %s583_s19 }
  0x5e   : > { %p586_p8 = pneg %p585_p6 }
  0x5f   : > { %450 = vmatpush3.bf16.msra.mxu0 %v521_v3  ;;  %p592_p3 = por %p591_p13, %p590_p10 }
  0x60   : > { %451 = vmatprep.subr.bf16.mxu0 %v659_v0 }
  0x61   : > { %p593_p7 = pnand %p592_p3, %p586_p8 }
  0x63   : > { %452 = vmatpush3.bf16.msra.mxu0 %v522_v4 }
  0x66   : > { %454 = vmatmul.mubr.msk.bf16.vlgmr.msra.gmra.mrb[0].mxu0 %vm270_vm1, %v230_v6 }
 0x139   : > { %v308_v9 = vpop.f32.mrb[0].mxu0 }
 0x13a   : > { %v309_v11 = vadd.f32 %v430_v8, %v308_v9  ;;  %v455_v13 = vpop.f32.mrb[1].mxu0 }
 0x13b   : > { %v311_v14 = vpop.f32.mrb[2].mxu0 }
 0x13c   : > { %523 = vtanh.f32 %v309_v11  ;;  %v456_v15 = vpop.f32.mrb[3].mxu0 }
 0x146   : > { %v524_v20 = vpop.eup %523 }
 0x147   : > { %v315_v21 = vmul.f32 5.0, %v524_v20 }
 0x149   : > { %v324_v22 = vsel %vm323_vm3, 2.0, %v315_v21 }
 0x14a   : > { %325 = vst [vmem:[%s227_s10] sm:$0xff] %v324_v22 }
 0x14b   : > { %596 = shalt.err (!%p593_p7)
}
 0x14c   : > { %s597_s25 = scalar_lea.hbm %s850_s5, 128  ;;  %s601_s21 = scalar_lea.hbm %s898_s4, 256 }
 0x14d   : > { %p598_p9 = scmp.ne.s32.totalorder %s850_s5, %s597_s25  ;;  %p602_p0 = scmp.lt.u32.totalorder %s850_s5, %s898_s4 }
 0x14e   : > { %p603_p11 = scmp.lt.u32.totalorder %s601_s21, %s597_s25  ;;  %p605_p4 = scmp.lt.u32.totalorder %s597_s25, %s850_s5 }
 0x14f   : > { %p599_p2 = pnand %p598_p9, %p779_p12 }
 0x150   : > { %p604_p1 = por %p603_p11, %p602_p0 }
 0x151   : > { %p600_p5 = pneg %p599_p2 }
 0x152   : > { %p606_p6 = por %p605_p4, %p604_p1 }
 0x154   : > { %p607_p8 = pnand %p606_p6, %p600_p5 }
 0x156   : > { %610 = shalt.err (!%p607_p8)
}
 0x157   : > { %463 = dma.vmem_to_hbm [thread:$0]  (%p779_p12), %s852_s14, 128, %s850_s5, %s327_s7  }
 0x158 PF: > { %s352_s28 = sand.u32 1, %s641_s15   ;;  %p913_p10 = scmp.ne.s32.totalorder %s903_s22, 0 }
 0x159   : > { %p914_p13 = scmp.ge.s32.totalorder %s653_s18, 2  ;;  %s353_s29 = scalar_lea.sflag [#allocation4], %s352_s28 }
 0x15b   : > { %p474_p3 = pnand %p914_p13, %p913_p10 }
 0x15d   : > { %636 = dma.done.wait (!%p474_p3), %s353_s29, 128  }
 0x15e   : > { %638 = vsyncadd (!%p474_p3), %s353_s29, 4294967168  ;;  %p18_p7 = scmp.ge.s32.totalorder %s744_s27, 4   ;;  %s915_s15 = smov %s645_s16 }
 0x15f   : > { %s916_s16 = smov %s649_s17  ;;  %s917_s17 = smov %s775_s24 }
 0x160   : > { %s918_s18 = smov %s744_s27  ;;  %20 = sbr.rel (!%p18_p7) target bundleno = 6 (0x6), region = 85 }
 0x167   :  { %358 = vsyncpa [#allocation3], 1 }
 0x168   :  { %360 = vsyncpa [#allocation3 + $0x1], 1 }
 0x169   :  { %361 = vsyncpa [#allocation6], 1 }
 0x16a   :  { %362 = vsyncpa [#allocation4], 1 }
 0x16b   :  { %364 = vsyncpa [#allocation4 + $0x1], 1 }

</bundles_post_ra>
